<compile_context>
chip_gen: v7x
topology: tpu7x:2x2x1
jax: 0.10.0
libtpu: 0.0.40
codegen_flags: <defaults>
</compile_context>

<pallas_src>
import math

import jax
import jax.numpy as jnp
from jax.experimental import pallas as pl
from jax.experimental.pallas import tpu as pltpu


def _identity_copy_kernel(x_ref, o_ref):
    # Pure passthrough of the current block.
    o_ref[...] = x_ref[...]


_TARGET_BLOCK_BYTES = 2 * 1024 * 1024  # ~2 MiB blocks: >=85% of HBM roofline


def pipeline_forward(x):
    """Identity forward of ColorizationAndInpaintingPipeline via a Pallas copy."""
    orig_shape = x.shape
    n = math.prod(orig_shape) if orig_shape else 1
    if n == 0:
        return x

    itemsize = jnp.dtype(x.dtype).itemsize
    # Sub-32-bit dtypes pack along sublanes: 8 rows (f32), 16 (bf16), 32 (int8/fp8).
    sublane = {4: 8, 2: 16, 1: 32}.get(itemsize, 8)

    # Fast path: reshape (free, contiguous) to a lane-dense 2-D slab with a wide
    # last dim so stores are unmasked and each grid step moves many bytes.
    lanes = None
    for cand in (16384, 8192, 4096, 2048, 1024, 512, 256, 128):
        if n % cand == 0:
            lanes = cand
            break

    if lanes is not None:
        rows = n // lanes
        slab = x.reshape(rows, lanes)

        # Target ~2 MiB per block, rounded down to the dtype's sublane packing.
        target_rows = max(sublane, _TARGET_BLOCK_BYTES // (lanes * itemsize))
        target_rows = max(sublane, (target_rows // sublane) * sublane)

        if rows <= target_rows:
            # Single full-extent block (exempt from the (sublane, 128) rule).
            tile_rows = rows
            grid = (1,)
        else:
            tile_rows = target_rows
            grid = (pl.cdiv(rows, tile_rows),)  # partial last block is masked

        out = pl.pallas_call(
            _identity_copy_kernel,
            out_shape=jax.ShapeDtypeStruct((rows, lanes), x.dtype),
            grid=grid,
            in_specs=[pl.BlockSpec((tile_rows, lanes), lambda i: (i, 0))],
            out_specs=pl.BlockSpec((tile_rows, lanes), lambda i: (i, 0)),
            input_output_aliases={0: 0},
            compiler_params=pltpu.CompilerParams(
                dimension_semantics=("parallel",),
            ),
        )(slab)
        return out.reshape(orig_shape)

    # Fallback: element count not a multiple of 128 — copy the whole array as a
    # single full-extent block (exempt from tiling divisibility rules).
    # TODO(synk): a huge tensor with size % 128 != 0 would not fit a single VMEM
    # block; image tensors (C*H*W multiples of 128) never hit this path.
    out = pl.pallas_call(
        _identity_copy_kernel,
        out_shape=jax.ShapeDtypeStruct(orig_shape, x.dtype),
        input_output_aliases={0: 0},
    )(x)
    return out


if __name__ == "__main__":
    key = jax.random.PRNGKey(0)

    # Small NCHW input consistent with the pipeline's expected image tensors
    # (batch=2, channels=3, spatial=16x16) — takes the single-block slab path.
    x = jax.random.normal(key, (2, 3, 16, 16), dtype=jnp.float32)
    y = jax.block_until_ready(pipeline_forward(x))
    assert y.shape == x.shape, (y.shape, x.shape)
    assert y.dtype == x.dtype, (y.dtype, x.dtype)
    assert bool(jnp.all(y == x)), "identity forward mismatch (small input)"

    # Moderate input that exercises the multi-block grid + partial last block.
    x2 = jax.random.normal(jax.random.PRNGKey(0), (1, 3, 512, 512), dtype=jnp.float32)
    y2 = jax.block_until_ready(pipeline_forward(x2))
    assert y2.shape == x2.shape and y2.dtype == x2.dtype
    assert bool(jnp.all(y2 == x2)), "identity forward mismatch (tiled input)"

    print("KERNEL_OK")
</pallas_src>

<mosaic_0001>
module attributes {stable_mosaic.version = 11 : i64} {
  func.func @_identity_copy_kernel(%arg0: i32, %arg1: memref<3x512xf32, #tpu.memory_space<vmem>>, %arg2: memref<3x512xf32, #tpu.memory_space<vmem>>) attributes {dimension_semantics = [#tpu.dimension_semantics<parallel>], iteration_bounds = array<i64: 1>, scalar_prefetch = 0 : i64, scratch_operands = 0 : i64, tpu.core_type = #tpu.core_type<tc>, window_params = [{transform_indices = @transform_0, window_bounds = array<i64: 3, 512>}, {transform_indices = @transform_1, window_bounds = array<i64: 3, 512>}]} {
    %c0 = arith.constant 0 : index
    %c0_0 = arith.constant 0 : index
    %0 = vector.load %arg1[%c0, %c0_0] : memref<3x512xf32, #tpu.memory_space<vmem>>, vector<3x512xf32>
    %c0_1 = arith.constant 0 : index
    %c0_2 = arith.constant 0 : index
    %1 = vector.load %arg2[%c0_1, %c0_2] : memref<3x512xf32, #tpu.memory_space<vmem>>, vector<3x512xf32>
    tpu.vector_store %arg2[%c0_1, %c0_2], %0 {strides = array<i32>} : memref<3x512xf32, #tpu.memory_space<vmem>>, vector<3x512xf32>,
    return
  }
  func.func @transform_0(%arg0: i32) -> (i32, i32) {
    %c0_i32 = arith.constant 0 : i32
    %c0_i32_0 = arith.constant 0 : i32
    return %arg0, %c0_i32 : i32, i32
  }
  func.func @transform_1(%arg0: i32) -> (i32, i32) {
    %c0_i32 = arith.constant 0 : i32
    %c0_i32_0 = arith.constant 0 : i32
    return %arg0, %c0_i32 : i32, i32
  }
}

</mosaic_0001>

<bundles_post_ra>
// kernel: tpu_custom_call.1
= control target key start
LH: loop header
LB: loop body
LE: loop exit
PB: predicated region body
PF: predicated region fallthrough
CT: control target
= control target key end

     0   :  { %6 = vsyncpa [#allocation3], 0  ;;  %s126_s0 = inlined_call_operand.hbm [shape: f32[3,512], index: 0, kind: input, shape index: {}, may-alias: {0,1}]   ;;  %s127_s1 = inlined_call_operand.hbm [shape: f32[3,512], index: 1, kind: output, shape index: {}, may-alias: {0,1}]  }
   0x1   :  { %7 = vsyncpa [#allocation4], 0  ;;  %s90_s6 = smov [#allocation2]   ;;  %s42_s10 = scalar_lea.hbm %s126_s0, 256 }
   0x2   :  { %s14_s7 = sshll.u32 %s90_s6, 4  ;;  %p43_p0 = scmp.ne.s32.totalorder %s126_s0, %s42_s10  ;;  %s15_s7 = int_to_ptr.vmem [resolvable:$true] %s14_s7 }
   0x3   :  { %p46_p1 = scmp.lt.u32.totalorder %s42_s10, %s126_s0 }
   0x5   :  { %p48_p2 = pnand %p46_p1, %p43_p0 }
   0x7   :  { %51 = shalt.err (!%p48_p2)
}
   0x8   :  { %s52_s15 = scalar_lea.vmem %s15_s7, 256  ;;  %p57_p4 = scmp.lt.s32.totalorder %s15_s7, %s15_s7 }
   0x9   :  { %p53_p3 = scmp.ne.s32.totalorder %s15_s7, %s52_s15  ;;  %p58_p5 = scmp.lt.s32.totalorder %s52_s15, %s52_s15 }
   0xb   :  { %p59_p6 = por %p58_p5, %p57_p4 }
   0xd   :  { %p60_p7 = pnand %p59_p6, %p53_p3 }
   0xf   :  { %63 = shalt.err (!%p60_p7)
}
  0x10   :  { %17 = dma.hbm_to_vmem [thread:$0]  %s126_s0, 256, %s15_s7, [#allocation3]  }
  0x11   :  { %86 = dma.done.wait [#allocation3], 256  }
  0x12   :  { %87 = vsyncadd [#allocation3], 4294967040  ;;  %s91_s18 = smov [#allocation5]   ;;  %v21_v0 = vld [vmem:[#allocation2] sm:$0x77] }
  0x13   :  { %s31_s19 = sshll.u32 %s91_s18, 4  ;;  %v22_v1 = vld [vmem:[#allocation2 + $0x8] sm:$0x77]  ;;  %23 = vst [vmem:[#allocation5] sm:$0x77] %v21_v0  ;;  %s32_s19 = int_to_ptr.vmem [resolvable:$true] %s31_s19 }
  0x14   :  { %24 = vst [vmem:[#allocation5 + $0x8] sm:$0x77] %v22_v1  ;;  %s64_s20 = scalar_lea.vmem %s32_s19, 256  ;;  %p69_p9 = scmp.lt.s32.totalorder %s32_s19, %s32_s19 }
  0x15   :  { %p65_p8 = scmp.ne.s32.totalorder %s32_s19, %s64_s20  ;;  %p70_p10 = scmp.lt.s32.totalorder %s64_s20, %s64_s20 }
  0x17   :  { %p71_p11 = por %p70_p10, %p69_p9 }
  0x19   :  { %p72_p12 = pnand %p71_p11, %p65_p8 }
  0x1b   :  { %75 = shalt.err (!%p72_p12)
}
  0x1c   :  { %s76_s0 = scalar_lea.hbm %s127_s1, 256 }
  0x1d   :  { %p77_p13 = scmp.ne.s32.totalorder %s127_s1, %s76_s0  ;;  %p80_p0 = scmp.lt.u32.totalorder %s76_s0, %s127_s1 }
  0x1f   :  { %p82_p1 = pnand %p80_p0, %p77_p13 }
  0x21   :  { %85 = shalt.err (!%p82_p1)
}
  0x22   :  { %34 = dma.vmem_to_hbm [thread:$0]  %s32_s19, 256, %s127_s1, [#allocation4]  }
  0x23   :  { %88 = dma.done.wait [#allocation4], 256  }
  0x24   :  { %89 = vsyncadd [#allocation4], 4294967040 }
  0x25   :  { %38 = vsyncpa [#allocation3], 1 }
  0x26   :  { %39 = vsyncpa [#allocation4], 1 }

</bundles_post_ra>
